<compile_context>
chip_gen: v5e
topology: v5e:2x2
jax: 0.10.0
libtpu: 0.0.40
codegen_flags: <defaults>
</compile_context>

<pallas_src>
import functools

import jax
import jax.numpy as jnp
import numpy as np
from jax.experimental import pallas as pl
from jax.experimental.pallas import tpu as pltpu


def _attn_kernel(x_ref, w1t_ref, w2t_ref, vt_ref, out_ref, *, rel_size):
    """One grid step processes TB batch elements (TB*S rows on the MXU).

    x_ref:   (TB, S, D_in)   activations (matmul dtype)
    w1t_ref: (D_in, D_out)   pre-transposed W1
    w2t_ref: (D_in, D_out)   pre-transposed W2
    vt_ref:  (D_out, R_pad)  pre-transposed V, zero-padded to a lane-dense width
    out_ref: (TB, S, R_pad)  f32 log-softmax scores (padded lanes hold garbage,
                             sliced away in the wrapper)
    """
    tb, s, d_in = x_ref.shape
    d_out = w1t_ref.shape[1]
    r_pad = vt_ref.shape[1]

    x3 = x_ref[...]                                  # (TB, S, D_in)
    x2 = x3.reshape(tb * s, d_in)                    # merge batch into the MXU M dim
    x_last = x3[:, s - 1, :]                         # (TB, D_in) last timestep per batch

    # encoder_score / decoder_score: MXU matmuls, f32 accumulation.
    enc = jnp.dot(x2, w1t_ref[...],
                  preferred_element_type=jnp.float32)        # (TB*S, D_out)
    dec = jnp.dot(x_last, w2t_ref[...],
                  preferred_element_type=jnp.float32)        # (TB, D_out)

    # energy = tanh(enc + dec), dec broadcast over the sequence dim (f32 VPU/EUP).
    energy = jnp.tanh(enc.reshape(tb, s, d_out) + dec[:, None, :])   # (TB, S, D_out)

    # e = energy @ V.T  -> (TB*S, R_pad); N is lane-dense (multiple of 128).
    e = jnp.dot(energy.reshape(tb * s, d_out).astype(vt_ref.dtype), vt_ref[...],
                preferred_element_type=jnp.float32)

    # log_softmax over the first rel_size lanes; padded lanes masked out.
    if rel_size < r_pad:
        col = jax.lax.broadcasted_iota(jnp.int32, e.shape, 1)
        e_valid = jnp.where(col < rel_size, e, -jnp.inf)
    else:
        e_valid = e
    m = jnp.max(e_valid, axis=-1, keepdims=True)
    lse = jnp.log(jnp.sum(jnp.exp(e_valid - m), axis=-1, keepdims=True)) + m
    out_ref[...] = (e - lse).reshape(tb, s, r_pad).astype(out_ref.dtype)


def _largest_divisor_at_most(n, cap):
    cap = max(1, min(n, cap))
    for d in range(cap, 0, -1):
        if n % d == 0:
            return d
    return 1


def attn_forward(encoder_outputs, w1, w2, v, *, matmul_dtype=None, target_rows=256):
    """encoder_outputs: (B, S, attn_input) float32
       w1, w2: (attn_output, attn_input)   (PyTorch nn.Linear convention)
       v:      (rel_size, attn_output)
       matmul_dtype: optional dtype (e.g. jnp.bfloat16) for MXU operands;
                     accumulation and the tanh/log-softmax epilogue stay f32.
    returns (B, S, rel_size) float32 log-softmax scores."""
    B, S, D_in = encoder_outputs.shape
    D_out, _ = w1.shape
    R = v.shape[0]
    R_pad = ((R + 127) // 128) * 128

    # One-time layout plumbing outside the kernel:
    #  - weights pre-transposed to (K, N) so the kernel never transposes
    #  - V zero-padded so the output store is lane-dense (last dim multiple of 128)
    w1t = jnp.transpose(w1)                          # (D_in, D_out)
    w2t = jnp.transpose(w2)                          # (D_in, D_out)
    vt = jnp.transpose(v)                            # (D_out, R)
    if R_pad != R:
        vt = jnp.pad(vt, ((0, 0), (0, R_pad - R)))

    x = encoder_outputs
    if matmul_dtype is not None:
        x = x.astype(matmul_dtype)
        w1t = w1t.astype(matmul_dtype)
        w2t = w2t.astype(matmul_dtype)
        vt = vt.astype(matmul_dtype)

    # Batch tile: fill the MXU M dimension (~target_rows rows per grid step), but
    # keep >=2 parallel grid steps when that does not drop the M fill below 128
    # (v7x has 2 TensorCores; the grid axis is marked "parallel").
    tb = _largest_divisor_at_most(B, max(1, target_rows // max(S, 1)))
    if B // tb < 2:
        half = _largest_divisor_at_most(B, max(1, tb // 2))
        if half < tb and half * S >= 128:
            tb = half

    # TODO(synk): for very large S / D_in, additionally tile S (with the last-timestep
    # row fed as its own block) and set vmem_limit_bytes to fit v7x's 64 MiB VMEM.

    kernel = functools.partial(_attn_kernel, rel_size=R)
    out = pl.pallas_call(
        kernel,
        out_shape=jax.ShapeDtypeStruct((B, S, R_pad), jnp.float32),
        grid_spec=pltpu.PrefetchScalarGridSpec(
            num_scalar_prefetch=0,
            grid=(B // tb,),
            in_specs=[
                pl.BlockSpec((tb, S, D_in), lambda i: (i, 0, 0)),
                pl.BlockSpec((D_in, D_out), lambda i: (0, 0)),
                pl.BlockSpec((D_in, D_out), lambda i: (0, 0)),
                pl.BlockSpec((D_out, R_pad), lambda i: (0, 0)),
            ],
            out_specs=pl.BlockSpec((tb, S, R_pad), lambda i: (i, 0, 0)),
        ),
        compiler_params=pltpu.CompilerParams(
            dimension_semantics=("parallel",)),
    )(x, w1t, w2t, vt)

    if R_pad != R:
        out = out[..., :R]
    return out


def xavier_normal(key, out_features, in_features):
    # matches nn.init.xavier_normal_ for a (out, in) weight matrix
    std = float(np.sqrt(2.0 / (in_features + out_features)))
    return std * jax.random.normal(key, (out_features, in_features), dtype=jnp.float32)


def attn_reference(encoder_outputs, w1, w2, v):
    # pure-JAX reference for correctness check
    decoder = encoder_outputs[:, -1:, :]
    enc = jnp.einsum("bsd,od->bso", encoder_outputs, w1)
    dec = jnp.einsum("bsd,od->bso", decoder, w2)
    energy = jnp.tanh(enc + dec)
    e = jnp.einsum("bso,ro->bsr", energy, v)
    return jax.nn.log_softmax(e, axis=-1)


if __name__ == "__main__":
    # small shapes consistent with the module
    B, S = 2, 8
    attn_input, attn_output, rel_size = 32, 32, 16

    key = jax.random.PRNGKey(0)
    k_x, k_w1, k_w2, k_v = jax.random.split(key, 4)

    encoder_outputs = jax.random.normal(k_x, (B, S, attn_input), dtype=jnp.float32)
    w1 = xavier_normal(k_w1, attn_output, attn_input)
    w2 = xavier_normal(k_w2, attn_output, attn_input)
    v = xavier_normal(k_v, rel_size, attn_output)

    ref = attn_reference(encoder_outputs, w1, w2, v)

    # f32 path: matches the PyTorch/JAX reference semantics tightly.
    out = jax.block_until_ready(attn_forward(encoder_outputs, w1, w2, v))
    np.testing.assert_allclose(np.asarray(out), np.asarray(ref), rtol=1e-5, atol=1e-5)

    # bf16-MXU path (v5e/v6e/v7x): bf16 operands, f32 accumulation + f32 epilogue.
    out_bf16 = jax.block_until_ready(
        attn_forward(encoder_outputs, w1, w2, v, matmul_dtype=jnp.bfloat16))
    np.testing.assert_allclose(np.asarray(out_bf16), np.asarray(ref),
                               rtol=1e-1, atol=1e-1)

    print("KERNEL_OK")
</pallas_src>

<mosaic_0001>
module attributes {stable_mosaic.version = 11 : i64} {
  func.func @_attn_kernel(%arg0: i32, %arg1: memref<2x8x32xf32, #tpu.memory_space<vmem>>, %arg2: memref<32x32xf32, #tpu.memory_space<vmem>>, %arg3: memref<32x32xf32, #tpu.memory_space<vmem>>, %arg4: memref<32x128xf32, #tpu.memory_space<vmem>>, %arg5: memref<2x8x128xf32, #tpu.memory_space<vmem>>) attributes {dimension_semantics = [#tpu.dimension_semantics<parallel>], iteration_bounds = array<i64: 1>, scalar_prefetch = 0 : i64, scratch_operands = 0 : i64, tpu.core_type = #tpu.core_type<tc>, window_params = [{transform_indices = @transform_0, window_bounds = array<i64: 2, 8, 32>}, {pipeline_mode = #tpu.pipeline_mode<synchronous>, transform_indices = @transform_1, window_bounds = array<i64: 32, 32>}, {pipeline_mode = #tpu.pipeline_mode<synchronous>, transform_indices = @transform_2, window_bounds = array<i64: 32, 32>}, {pipeline_mode = #tpu.pipeline_mode<synchronous>, transform_indices = @transform_3, window_bounds = array<i64: 32, 128>}, {transform_indices = @transform_4, window_bounds = array<i64: 2, 8, 128>}]} {
    %c0 = arith.constant 0 : index
    %c0_0 = arith.constant 0 : index
    %c0_1 = arith.constant 0 : index
    %0 = vector.load %arg1[%c0, %c0_0, %c0_1] : memref<2x8x32xf32, #tpu.memory_space<vmem>>, vector<2x8x32xf32>
    %1 = vector.shape_cast %0 : vector<2x8x32xf32> to vector<16x32xf32>
    %2 = vector.extract_strided_slice %0 {offsets = [0, 7, 0], sizes = [2, 1, 32], strides = [1, 1, 1]} : vector<2x8x32xf32> to vector<2x1x32xf32>
    %3 = vector.shape_cast %2 : vector<2x1x32xf32> to vector<2x32xf32>
    %c0_2 = arith.constant 0 : index
    %c0_3 = arith.constant 0 : index
    %4 = vector.load %arg2[%c0_2, %c0_3] : memref<32x32xf32, #tpu.memory_space<vmem>>, vector<32x32xf32>
    %cst = arith.constant dense<0.000000e+00> : vector<16x32xf32>
    %5 = tpu.matmul %1, %4, %cst {dimension_numbers = #tpu.dot_dimension_numbers<[1], [0], [0], [1], [0, 0, 1, 1], [], []>} : vector<16x32xf32>, vector<32x32xf32>, vector<16x32xf32> -> vector<16x32xf32>
    %c0_4 = arith.constant 0 : index
    %c0_5 = arith.constant 0 : index
    %6 = vector.load %arg3[%c0_4, %c0_5] : memref<32x32xf32, #tpu.memory_space<vmem>>, vector<32x32xf32>
    %cst_6 = arith.constant dense<0.000000e+00> : vector<2x32xf32>
    %7 = tpu.matmul %3, %6, %cst_6 {dimension_numbers = #tpu.dot_dimension_numbers<[1], [0], [0], [1], [0, 0, 1, 1], [], []>} : vector<2x32xf32>, vector<32x32xf32>, vector<2x32xf32> -> vector<2x32xf32>
    %8 = vector.shape_cast %5 : vector<16x32xf32> to vector<2x8x32xf32>
    %9 = vector.shape_cast %7 : vector<2x32xf32> to vector<2x1x32xf32>
    %10 = vector.broadcast %9 : vector<2x1x32xf32> to vector<2x8x32xf32>
    %11 = arith.addf %8, %10 : vector<2x8x32xf32>
    %12 = math.tanh %11 : vector<2x8x32xf32>
    %13 = vector.shape_cast %12 : vector<2x8x32xf32> to vector<16x32xf32>
    %c0_7 = arith.constant 0 : index
    %c0_8 = arith.constant 0 : index
    %14 = vector.load %arg4[%c0_7, %c0_8] : memref<32x128xf32, #tpu.memory_space<vmem>>, vector<32x128xf32>
    %cst_9 = arith.constant dense<0.000000e+00> : vector<16x128xf32>
    %15 = tpu.matmul %13, %14, %cst_9 {dimension_numbers = #tpu.dot_dimension_numbers<[1], [0], [0], [1], [0, 0, 1, 1], [], []>} : vector<16x32xf32>, vector<32x128xf32>, vector<16x128xf32> -> vector<16x128xf32>
    %16 = tpu.iota {dimensions = array<i32: 1>} : vector<16x128xi32>
    %c16_i32 = arith.constant 16 : i32
    %17 = vector.broadcast %c16_i32 : i32 to vector<16x128xi32>
    %18 = arith.cmpi slt, %16, %17 : vector<16x128xi32>
    %cst_10 = arith.constant 0xFF800000 : f32
    %19 = vector.broadcast %cst_10 : f32 to vector<16x128xf32>
    %20 = arith.select %18, %15, %19 : vector<16x128xi1>, vector<16x128xf32>
    %cst_11 = arith.constant dense<0xFF800000> : vector<16xf32>
    %21 = vector.multi_reduction <maximumf>, %20, %cst_11 [1] : vector<16x128xf32> to vector<16xf32>
    %22 = vector.shape_cast %21 : vector<16xf32> to vector<16x1xf32>
    %23 = vector.broadcast %22 : vector<16x1xf32> to vector<16x128xf32>
    %24 = arith.subf %20, %23 : vector<16x128xf32>
    %25 = math.exp %24 : vector<16x128xf32>
    %cst_12 = arith.constant dense<0.000000e+00> : vector<16xf32>
    %26 = vector.multi_reduction <add>, %25, %cst_12 [1] : vector<16x128xf32> to vector<16xf32>
    %27 = vector.shape_cast %26 : vector<16xf32> to vector<16x1xf32>
    %28 = math.log %27 : vector<16x1xf32>
    %29 = arith.addf %28, %22 : vector<16x1xf32>
    %30 = vector.broadcast %29 : vector<16x1xf32> to vector<16x128xf32>
    %31 = arith.subf %15, %30 : vector<16x128xf32>
    %32 = vector.shape_cast %31 : vector<16x128xf32> to vector<2x8x128xf32>
    %c0_13 = arith.constant 0 : index
    %c0_14 = arith.constant 0 : index
    %c0_15 = arith.constant 0 : index
    %33 = vector.load %arg5[%c0_13, %c0_14, %c0_15] : memref<2x8x128xf32, #tpu.memory_space<vmem>>, vector<2x8x128xf32>
    tpu.vector_store %arg5[%c0_13, %c0_14, %c0_15], %32 {strides = array<i32>} : memref<2x8x128xf32, #tpu.memory_space<vmem>>, vector<2x8x128xf32>,
    return
  }
  func.func @transform_0(%arg0: i32) -> (i32, i32, i32) {
    %c0_i32 = arith.constant 0 : i32
    %c0_i32_0 = arith.constant 0 : i32
    %c0_i32_1 = arith.constant 0 : i32
    return %arg0, %c0_i32, %c0_i32_0 : i32, i32, i32
  }
  func.func @transform_1(%arg0: i32) -> (i32, i32) {
    %c0_i32 = arith.constant 0 : i32
    %c0_i32_0 = arith.constant 0 : i32
    %c0_i32_1 = arith.constant 0 : i32
    return %c0_i32, %c0_i32_0 : i32, i32
  }
  func.func @transform_2(%arg0: i32) -> (i32, i32) {
    %c0_i32 = arith.constant 0 : i32
    %c0_i32_0 = arith.constant 0 : i32
    %c0_i32_1 = arith.constant 0 : i32
    return %c0_i32, %c0_i32_0 : i32, i32
  }
  func.func @transform_3(%arg0: i32) -> (i32, i32) {
    %c0_i32 = arith.constant 0 : i32
    %c0_i32_0 = arith.constant 0 : i32
    %c0_i32_1 = arith.constant 0 : i32
    return %c0_i32, %c0_i32_0 : i32, i32
  }
  func.func @transform_4(%arg0: i32) -> (i32, i32, i32) {
    %c0_i32 = arith.constant 0 : i32
    %c0_i32_0 = arith.constant 0 : i32
    %c0_i32_1 = arith.constant 0 : i32
    return %arg0, %c0_i32, %c0_i32_0 : i32, i32, i32
  }
}

</mosaic_0001>

<bundles_post_ra>
// kernel: tpu_custom_call.1
= control target key start
LH: loop header
LB: loop body
LE: loop exit
PB: predicated region body
PF: predicated region fallthrough
CT: control target
= control target key end

     0   :  { %9 = vsyncpa [#allocation3], 0  ;;  %s463_s0 = inlined_call_operand.hbm [shape: f32[2,8,32], index: 0, kind: input, shape index: {}]   ;;  %s464_s1 = inlined_call_operand.hbm [shape: f32[32,32], index: 1, kind: input, shape index: {}]   ;;  %s465_s2 = inlined_call_operand.hbm [shape: f32[32,32], index: 2, kind: input, shape index: {}]   ;;  %s466_s3 = inlined_call_operand.hbm [shape: f32[32,128], index: 3, kind: input, shape index: {}]   ;;  %s467_s4 = inlined_call_operand.hbm [shape: f32[2,8,128], index: 4, kind: output, shape index: {}]  }
   0x1   :  { %10 = vsyncpa [#allocation6], 0 }
   0x2   :  { %11 = vsyncpa [#allocation9], 0 }
   0x3   :  { %12 = vsyncpa [#allocation4], 0  ;;  %s30_s17 = sshll.u32 %s464_s1, 4  ;;  %s396_s18 = smov [#allocation5]   ;;  %s31_s17 = int_to_ptr.hbm [resolvable:$true] %s30_s17 }
   0x4   :  { %s32_s19 = sshll.u32 %s396_s18, 4  ;;  %s17_s22 = sshll.u32 %s463_s0, 4  ;;  %s33_s19 = int_to_ptr.vmem [resolvable:$true] %s32_s19  ;;  %s18_s22 = int_to_ptr.hbm [resolvable:$true] %s17_s22 }
   0x5   :  { %s397_s23 = smov 128   ;;  %s398_s24 = smov 8  }
   0x6   :  { %38 = dma.hbm_to_vmem [thread:$0]  %s31_s17, 512, %s33_s19, [#allocation6], %s397_s23, %s397_s23, %s398_s24  }
   0x7   :  { %s399_s25 = smov [#allocation2]   ;;  %s43_s1 = sshll.u32 %s465_s2, 4  ;;  %s44_s1 = int_to_ptr.hbm [resolvable:$true] %s43_s1 }
   0x8   :  { %s19_s26 = sshll.u32 %s399_s25, 4  ;;  %s56_s30 = sshll.u32 %s466_s3, 4  ;;  %s20_s26 = int_to_ptr.vmem [resolvable:$true] %s19_s26  ;;  %s57_s30 = int_to_ptr.hbm [resolvable:$true] %s56_s30 }
   0x9   :  { %25 = dma.hbm_to_vmem [thread:$0]  %s18_s22, 256, %s20_s26, [#allocation3], %s397_s23, %s397_s23, %s398_s24  }
   0xa   :  { %s400_s5 = smov [#allocation7]   ;;  %s401_s7 = smov [#allocation8]  }
   0xb   :  { %s45_s6 = sshll.u32 %s400_s5, 4  ;;  %s58_s2 = sshll.u32 %s401_s7, 4  ;;  %s46_s6 = int_to_ptr.vmem [resolvable:$true] %s45_s6  ;;  %s59_s2 = int_to_ptr.vmem [resolvable:$true] %s58_s2 }
   0xc   :  { %51 = dma.hbm_to_vmem [thread:$0]  %s44_s1, 512, %s46_s6, [#allocation6], %s397_s23, %s397_s23, %s398_s24  }
   0xd   :  { %64 = dma.hbm_to_vmem [thread:$0]  %s57_s30, 512, %s59_s2, [#allocation9], %s397_s23, %s397_s23, %s398_s24  }
   0xe   :  { %388 = dma.done.wait [#allocation3], 256  }
   0xf   :  { %389 = vsyncadd [#allocation3], 4294967040 }
  0x10   :  { %390 = dma.done.wait [#allocation6], 1024  }
  0x11   :  { %391 = vsyncadd [#allocation6], 4294966272 }
  0x12   :  { %392 = dma.done.wait [#allocation9], 512  }
  0x13   :  { %393 = vsyncadd [#allocation9], 4294966784  ;;  %v86_v0 = vld [vmem:[#allocation5 + $0x18] sm:$0xff]  ;;  %v85_v2 = vld [vmem:[#allocation5 + $0x10] sm:$0xff]  ;;  %vm123_vm0 = vcmask 1041409   ;;  %vm87_vm1 = vcmask 261120   ;;  %v190_v27 = vlaneseq }
  0x14   :  { %v120_v1 = vld [vmem:[#allocation7 + $0x18] sm:$0xff]  ;;  %245 = vmatpush.msra.mxu3 %v86_v0  ;;  %v119_v3 = vld [vmem:[#allocation7 + $0x10] sm:$0xff]  ;;  %106 = vmatpush.msra.mxu0 %v86_v0  ;;  %v84_v4 = vld [vmem:[#allocation5 + $0x8] sm:$0xff]  ;;  %s402_s3 = smov [#allocation10]   ;;  %s225_s11 = sshll.u32 %s467_s4, 4  ;;  %s226_s11 = int_to_ptr.hbm [resolvable:$true] %s225_s11 }
  0x15   :  { %139 = vmatpush.msra.mxu1 %v120_v1  ;;  %v118_v5 = vld [vmem:[#allocation7 + $0x8] sm:$0xff]  ;;  %v82_v6 = vld [vmem:[#allocation2 + $0x8] sm:$0xff]  ;;  %v81_v8 = vld [vmem:[#allocation2] sm:$0xff]  ;;  %v191_v28 = vand.u32 127, %v190_v27  ;;  %s223_s8 = sshll.u32 %s402_s3, 4  ;;  %s224_s8 = int_to_ptr.vmem [resolvable:$true] %s223_s8 }
  0x16   :  { %246 = vmatpush.msra.mxu3 %v85_v2  ;;  %v122_v7 = vrot.slane %v82_v6, 6  ;;  %107 = vmatpush.msra.mxu0 %v85_v2  ;;  %v83_v9 = vld [vmem:[#allocation5] sm:$0xff]  ;;  %v121_v11 = vrot.slane %v81_v8, 7  ;;  %v160_v13 = vld [vmem:[#allocation8 + $0x18] sm:$0xff]  ;;  %v159_v14 = vld [vmem:[#allocation8 + $0x10] sm:$0xff] }
  0x17   :  { %140 = vmatpush.msra.mxu1 %v119_v3  ;;  %v117_v10 = vld [vmem:[#allocation7] sm:$0xff]  ;;  %179 = vmatpush.msra.mxu2 %v160_v13  ;;  %v158_v15 = vld [vmem:[#allocation8 + $0x8] sm:$0xff]  ;;  %vm192_vm2 = vcmp.lt.s32.totalorder %v191_v28, 16 }
  0x18   :  { %247 = vmatpush.msra.mxu3 %v84_v4  ;;  %108 = vmatpush.msra.mxu0 %v84_v4  ;;  %v124_v12 = vsel %vm123_vm0, %v122_v7, %v121_v11  ;;  %v157_v16 = vld [vmem:[#allocation8] sm:$0xff] }
  0x19   :  { %141 = vmatpush.msra.mxu1 %v118_v5  ;;  %180 = vmatpush.msra.mxu2 %v159_v14 }
  0x1a   :  { %248 = vmatpush.msra.mxu3 %v83_v9  ;;  %109 = vmatpush.msra.mxu0 %v83_v9 }
  0x1b   :  { %142 = vmatpush.msra.mxu1 %v117_v10  ;;  %241 = vmatmul.msk.f32.vlgmr.msra.gmra.mxu3 %vm87_vm1, %v82_v6 }
  0x1c   :  { %242 = vmatmul.msk.f32.vlgmr.msra.gmra.mxu1 %vm87_vm1, %v124_v12  ;;  %240 = vmatmul.msk.f32.vlgmr.msra.gmra.mxu0 %vm87_vm1, %v81_v8 }
  0x1d   :  { %181 = vmatpush.msra.mxu2 %v158_v15 }
  0x1f   :  { %182 = vmatpush.msra.mxu2 %v157_v16 }
  0x99   :  { %v144_v17 = vpop.f32.mrf.mxu1  ;;  %v111_v19 = vpop.f32.mrf.mxu0 }
  0x9a   :  { %v149_v18 = vperm.slane %v144_v17, 0  ;;  %v148_v20 = vrot.slane %v144_v17, 1 }
  0x9c   :  { %v153_v21 = vadd.f32 %v149_v18, %v111_v19  ;;  %v150_v23 = vperm.slane %v148_v20, 0 }
  0x9e   :  { %256 = vtanh.f32 %v153_v21  ;;  %v114_v22 = vpop.f32.mrf.mxu3 }
  0x9f   :  { %v154_v24 = vadd.f32 %v150_v23, %v114_v22 }
  0xa1   :  { %258 = vtanh.f32 %v154_v24 }
  0xa4   :  { %v257_v25 = vpop.eup %256 }
  0xa5   :  { %243 = vmatmul.msk.f32.vlgmr.msra.gmra.mxu2 %vm87_vm1, %v257_v25 }
  0xa7   :  { %v259_v26 = vpop.eup %258 }
  0xad   :  { %244 = vmatmul.msk.f32.gmra.mxu2 %vm87_vm1, %v259_v26 }
 0x128   :  { %v184_v29 = vpop.f32.mrf.mxu2 }
 0x129   :  { %v193_v30 = vsel %vm192_vm2, %v184_v29, -inf }
 0x12a   :  { %195 = vmax.xlane.f32.xlu0 %v193_v30 }
 0x130   :  { %v187_v31 = vpop.f32.mrf.mxu2 }
 0x131   :  { %v194_v32 = vsel %vm192_vm2, %v187_v31, -inf }
 0x132   :  { %197 = vmax.xlane.f32.xlu0 %v194_v32 }
 0x19d   :  { %v196_v33 = vpop.xlane.xlu0 %195 }
 0x19e   :  { %v199_v34 = vsub.f32 %v193_v30, %v196_v33 }
 0x1a0   :  { %v201_v35 = vmul.f32 1.442695, %v199_v34 }
 0x1a2   :  { %260 = vpow2.f32 %v201_v35 }
 0x1a5   :  { %v198_v36 = vpop.xlane.xlu0 %197 }
 0x1a6   :  { %v200_v37 = vsub.f32 %v194_v32, %v198_v36 }
 0x1a8   :  { %v261_v38 = vpop.eup %260  ;;  %v203_v39 = vmul.f32 1.442695, %v200_v37 }
 0x1a9   :  { %205 = vadd.xlane.f32.xlu1 %v261_v38 }
 0x1aa   :  { %262 = vpow2.f32 %v203_v39 }
 0x1b0   :  { %v263_v40 = vpop.eup %262 }
 0x1b1   :  { %207 = vadd.xlane.f32.xlu1 %v263_v40 }
 0x21c   :  { %v206_v41 = vpop.xlane.xlu1 %205 }
 0x21d   :  { %264 = vlog2.f32 %v206_v41 }
 0x223   :  { %v265_v42 = vpop.eup %264 }
 0x224   :  { %v210_v43 = vmul.f32 0.6931472, %v265_v42  ;;  %v208_v44 = vpop.xlane.xlu1 %207 }
 0x225   :  { %266 = vlog2.f32 %v208_v44 }
 0x226   :  { %v213_v45 = vadd.f32 %v210_v43, %v196_v33 }
 0x228   :  { %v215_v46 = vsub.f32 %v184_v29, %v213_v45 }
 0x22a   :  { %217 = vst [vmem:[#allocation10] sm:$0xff] %v215_v46 }
 0x22b   :  { %v267_v47 = vpop.eup %266 }
 0x22c   :  { %v212_v48 = vmul.f32 0.6931472, %v267_v47 }
 0x22e   :  { %v214_v49 = vadd.f32 %v212_v48, %v198_v36 }
 0x230   :  { %v216_v50 = vsub.f32 %v187_v31, %v214_v49 }
 0x232   :  { %218 = vst [vmem:[#allocation10 + $0x8] sm:$0xff] %v216_v50 }
 0x233   :  { %231 = dma.vmem_to_hbm [thread:$0]  %s224_s8, 256, %s226_s11, [#allocation4], %s397_s23, %s397_s23, %s398_s24  }
 0x234   :  { %394 = dma.done.wait [#allocation4], 256  }
 0x235   :  { %395 = vsyncadd [#allocation4], 4294967040 }
 0x236   :  { %236 = vsyncpa [#allocation3], 1 }
 0x237   :  { %237 = vsyncpa [#allocation6], 1 }
 0x238   :  { %238 = vsyncpa [#allocation9], 1 }
 0x239   :  { %239 = vsyncpa [#allocation4], 1 }

</bundles_post_ra>
